<compile_context>
chip_gen: v7x
topology: tpu7x:2x2x1
jax: 0.10.0
libtpu: 0.0.40
codegen_flags: <defaults>
</compile_context>

<pallas_src>
import functools
import math

import jax
import jax.numpy as jnp
from jax.experimental import pallas as pl
from jax.experimental.pallas import tpu as pltpu

# ---- small synthetic BERT config (stands in for roberta-wwm-large) ----
VOCAB = 128
TYPE_VOCAB = 2
MAX_POS = 64
HIDDEN = 32
HEADS = 4
HEAD_DIM = HIDDEN // HEADS
LAYERS = 2
INTERMEDIATE = 64
LN_EPS = 1e-12


# ------------------------- Pallas kernels -------------------------------

def _embed_ln_kernel(e_ref, g_ref, b_ref, o_ref):
    """Embedding-sum LayerNorm, one batch element per grid step."""
    x = e_ref[0]                                    # (S, H) f32
    mean = jnp.mean(x, axis=-1, keepdims=True)
    var = jnp.mean(jnp.square(x - mean), axis=-1, keepdims=True)
    y = (x - mean) * jax.lax.rsqrt(var + LN_EPS) * g_ref[...] + b_ref[...]
    o_ref[0] = y.astype(o_ref.dtype)


def embed_layernorm(emb, g, b):
    """emb: (B, S, H) f32 -> (B, S, H) f32 LayerNorm over last dim."""
    B, S, H = emb.shape
    return pl.pallas_call(
        _embed_ln_kernel,
        out_shape=jax.ShapeDtypeStruct((B, S, H), jnp.float32),
        grid=(B,),
        in_specs=[pl.BlockSpec((1, S, H), lambda i: (i, 0, 0)),
                  pl.BlockSpec((1, H), lambda i: (0, 0)),
                  pl.BlockSpec((1, H), lambda i: (0, 0))],
        out_specs=pl.BlockSpec((1, S, H), lambda i: (i, 0, 0)),
        compiler_params=pltpu.CompilerParams(
            dimension_semantics=("parallel",)),
    )(emb, g.reshape(1, H), b.reshape(1, H))


def _encoder_layer_kernel(h_ref, m_ref, wqkv_ref, bqkv_ref, wo_ref, bo_ref,
                          ln1_g_ref, ln1_b_ref, wi_ref, bi_ref,
                          wo2_ref, bo2_ref, ln2_g_ref, ln2_b_ref, o_ref,
                          *, heads, head_dim, scale):
    """One full BERT encoder layer for a single batch element, all in VMEM."""
    h = h_ref[0]                                    # (S, H) f32
    m = m_ref[0]                                    # (1, S) additive mask
    hidden = heads * head_dim

    # --- fused QKV projection: one bf16 MXU matmul, f32 accumulation ---
    qkv = (jnp.dot(h.astype(jnp.bfloat16), wqkv_ref[...],
                   preferred_element_type=jnp.float32) + bqkv_ref[...])

    # --- per-head attention; heads sliced out of the lane dim, no transposes
    #     through HBM.  Softmax math stays in f32 (v5e has no bf16 VPU/EUP). ---
    ctx_heads = []
    for hd in range(heads):
        lo = hd * head_dim
        qh = qkv[:, lo:lo + head_dim].astype(jnp.bfloat16)
        kh = qkv[:, hidden + lo:hidden + lo + head_dim].astype(jnp.bfloat16)
        vh = qkv[:, 2 * hidden + lo:2 * hidden + lo + head_dim].astype(jnp.bfloat16)
        # scores: q @ k^T via dot_general (contraction over head_dim)
        s = jax.lax.dot_general(qh, kh, (((1,), (1,)), ((), ())),
                                preferred_element_type=jnp.float32) * scale
        s = s + m                                   # (S, S) + (1, S) broadcast
        s = s - jnp.max(s, axis=-1, keepdims=True)
        p = jnp.exp(s)
        p = p * pl.reciprocal(jnp.sum(p, axis=-1, keepdims=True), approx=True)
        ctx_heads.append(jnp.dot(p.astype(jnp.bfloat16), vh,
                                 preferred_element_type=jnp.float32))
    ctx = jnp.concatenate(ctx_heads, axis=-1)       # (S, H) f32

    # --- attention output projection + residual + LayerNorm1 (fused) ---
    attn_out = (jnp.dot(ctx.astype(jnp.bfloat16), wo_ref[...],
                        preferred_element_type=jnp.float32) + bo_ref[...])
    x = attn_out + h
    mean = jnp.mean(x, axis=-1, keepdims=True)
    var = jnp.mean(jnp.square(x - mean), axis=-1, keepdims=True)
    x = (x - mean) * jax.lax.rsqrt(var + LN_EPS) * ln1_g_ref[...] + ln1_b_ref[...]

    # --- FFN with exact-erf GELU + residual + LayerNorm2 (fused) ---
    inter = (jnp.dot(x.astype(jnp.bfloat16), wi_ref[...],
                     preferred_element_type=jnp.float32) + bi_ref[...])
    inter = 0.5 * inter * (1.0 + jax.lax.erf(inter * 0.7071067811865476))
    ffn = (jnp.dot(inter.astype(jnp.bfloat16), wo2_ref[...],
                   preferred_element_type=jnp.float32) + bo2_ref[...])
    y = ffn + x
    mean = jnp.mean(y, axis=-1, keepdims=True)
    var = jnp.mean(jnp.square(y - mean), axis=-1, keepdims=True)
    y = (y - mean) * jax.lax.rsqrt(var + LN_EPS) * ln2_g_ref[...] + ln2_b_ref[...]

    o_ref[0] = y.astype(o_ref.dtype)


def encoder_layer(h, mask_add, lyr):
    """h: (B, S, H) f32, mask_add: (B, 1, S) additive -> (B, S, H) f32."""
    B, S, H = h.shape
    I = INTERMEDIATE
    kern = functools.partial(_encoder_layer_kernel, heads=HEADS,
                             head_dim=HEAD_DIM, scale=1.0 / math.sqrt(HEAD_DIM))
    return pl.pallas_call(
        kern,
        out_shape=jax.ShapeDtypeStruct((B, S, H), jnp.float32),
        grid=(B,),
        in_specs=[
            pl.BlockSpec((1, S, H), lambda b: (b, 0, 0)),      # h
            pl.BlockSpec((1, 1, S), lambda b: (b, 0, 0)),      # additive mask
            pl.BlockSpec((H, 3 * H), lambda b: (0, 0)),        # wqkv (bf16)
            pl.BlockSpec((1, 3 * H), lambda b: (0, 0)),        # bqkv
            pl.BlockSpec((H, H), lambda b: (0, 0)),            # wo   (bf16)
            pl.BlockSpec((1, H), lambda b: (0, 0)),            # bo
            pl.BlockSpec((1, H), lambda b: (0, 0)),            # ln1_g
            pl.BlockSpec((1, H), lambda b: (0, 0)),            # ln1_b
            pl.BlockSpec((H, I), lambda b: (0, 0)),            # wi   (bf16)
            pl.BlockSpec((1, I), lambda b: (0, 0)),            # bi
            pl.BlockSpec((I, H), lambda b: (0, 0)),            # wo2  (bf16)
            pl.BlockSpec((1, H), lambda b: (0, 0)),            # bo2
            pl.BlockSpec((1, H), lambda b: (0, 0)),            # ln2_g
            pl.BlockSpec((1, H), lambda b: (0, 0)),            # ln2_b
        ],
        out_specs=pl.BlockSpec((1, S, H), lambda b: (b, 0, 0)),
        compiler_params=pltpu.CompilerParams(
            dimension_semantics=("parallel",)),
    )(h, mask_add,
      lyr["wqkv"], lyr["bqkv"].reshape(1, 3 * H),
      lyr["wo"], lyr["bo"].reshape(1, H),
      lyr["ln1_g"].reshape(1, H), lyr["ln1_b"].reshape(1, H),
      lyr["wi"], lyr["bi"].reshape(1, I),
      lyr["wo2"], lyr["bo2"].reshape(1, H),
      lyr["ln2_g"].reshape(1, H), lyr["ln2_b"].reshape(1, H))


# ---------------------- parameters (deterministic) ----------------------

def init_params(key):
    def norm(k, shape, dtype=jnp.float32):
        return (jax.random.normal(k, shape, jnp.float32) * 0.02).astype(dtype)

    keys = iter(jax.random.split(key, 64))
    params = {
        "word_emb": norm(next(keys), (VOCAB, HIDDEN)),
        "pos_emb": norm(next(keys), (MAX_POS, HIDDEN)),
        "type_emb": norm(next(keys), (TYPE_VOCAB, HIDDEN)),
        "emb_ln_g": jnp.ones((HIDDEN,), jnp.float32),
        "emb_ln_b": jnp.zeros((HIDDEN,), jnp.float32),
        "fc_w": norm(next(keys), (HIDDEN, 1)),
        "fc_b": jnp.zeros((1,), jnp.float32),
    }
    layers = []
    for _ in range(LAYERS):
        layers.append({
            # Q/K/V weights concatenated for a single fused matmul; matmul
            # weights stored in bf16 (f32 accumulation inside the kernel).
            "wqkv": norm(next(keys), (HIDDEN, 3 * HIDDEN), jnp.bfloat16),
            "bqkv": jnp.zeros((3 * HIDDEN,), jnp.float32),
            "wo": norm(next(keys), (HIDDEN, HIDDEN), jnp.bfloat16),
            "bo": jnp.zeros((HIDDEN,), jnp.float32),
            "ln1_g": jnp.ones((HIDDEN,), jnp.float32),
            "ln1_b": jnp.zeros((HIDDEN,), jnp.float32),
            "wi": norm(next(keys), (HIDDEN, INTERMEDIATE), jnp.bfloat16),
            "bi": jnp.zeros((INTERMEDIATE,), jnp.float32),
            "wo2": norm(next(keys), (INTERMEDIATE, HIDDEN), jnp.bfloat16),
            "bo2": jnp.zeros((HIDDEN,), jnp.float32),
            "ln2_g": jnp.ones((HIDDEN,), jnp.float32),
            "ln2_b": jnp.zeros((HIDDEN,), jnp.float32),
        })
    params["layers"] = layers
    return params


# ----------------------------- forward ----------------------------------

def bert_for_house_qa(params, x):
    """x: (B, 3, S) int32 -> (feat (B, HIDDEN), logit (B, 1))."""
    B, _, S = x.shape
    input_ids = x[:, 0, :]
    attention_mask = x[:, 1, :].astype(jnp.float32)
    token_type_ids = x[:, 2, :]

    # Embedding gathers are plain-JAX glue (XLA fuses the adds);
    # the LayerNorm runs in Pallas with a parallel batch grid.
    emb = (jnp.take(params["word_emb"], input_ids, axis=0)
           + params["pos_emb"][None, :S, :]
           + jnp.take(params["type_emb"], token_type_ids, axis=0))
    h = embed_layernorm(emb, params["emb_ln_g"], params["emb_ln_b"])  # (B,S,H)

    # Extended additive attention mask, as in HF BertModel.
    mask_add = ((1.0 - attention_mask) * -10000.0).reshape(B, 1, S)

    # One fused Pallas kernel per encoder layer.
    for lyr in params["layers"]:
        h = encoder_layer(h, mask_add, lyr)

    feat = h[:, 0, :]                               # CLS token, (B, HIDDEN) f32
    # TODO(synk): Dropout(0.5) is identity here (eval-mode forward).
    # fc+sigmoid head stays in plain XLA: a (B, 1) output is lane-sparse and
    # pallas_call launch overhead would exceed the compute.
    logit = jax.nn.sigmoid(feat @ params["fc_w"] + params["fc_b"][None, :])
    return feat, logit


if __name__ == "__main__":
    key = jax.random.PRNGKey(0)
    pkey, ikey, tkey = jax.random.split(key, 3)
    params = init_params(pkey)

    B, S = 2, 8
    input_ids = jax.random.randint(ikey, (B, S), 0, VOCAB, dtype=jnp.int32)
    attention_mask = jnp.ones((B, S), jnp.int32).at[:, -2:].set(0)  # last 2 = padding
    token_type_ids = jax.random.randint(tkey, (B, S), 0, TYPE_VOCAB, dtype=jnp.int32)
    x = jnp.stack([input_ids, attention_mask, token_type_ids], axis=1)  # (B, 3, S)

    fwd = jax.jit(bert_for_house_qa)
    feat, logit = fwd(params, x)
    jax.block_until_ready((feat, logit))

    assert feat.shape == (B, HIDDEN) and feat.dtype == jnp.float32
    assert logit.shape == (B, 1) and logit.dtype == jnp.float32
    assert bool(jnp.all(jnp.isfinite(feat))) and bool(jnp.all((logit > 0) & (logit < 1)))
    print("KERNEL_OK")
</pallas_src>

<mosaic_0001>
module attributes {stable_mosaic.version = 11 : i64} {
  func.func @_embed_ln_kernel(%arg0: i32, %arg1: memref<1x8x32xf32, #tpu.memory_space<vmem>>, %arg2: memref<1x32xf32, #tpu.memory_space<vmem>>, %arg3: memref<1x32xf32, #tpu.memory_space<vmem>>, %arg4: memref<1x8x32xf32, #tpu.memory_space<vmem>>) attributes {dimension_semantics = [#tpu.dimension_semantics<parallel>], iteration_bounds = array<i64: 2>, scalar_prefetch = 0 : i64, scratch_operands = 0 : i64, tpu.core_type = #tpu.core_type<tc>, window_params = [{transform_indices = @transform_0, window_bounds = array<i64: 1, 8, 32>}, {pipeline_mode = #tpu.pipeline_mode<synchronous>, transform_indices = @transform_1, window_bounds = array<i64: 1, 32>}, {pipeline_mode = #tpu.pipeline_mode<synchronous>, transform_indices = @transform_2, window_bounds = array<i64: 1, 32>}, {transform_indices = @transform_3, window_bounds = array<i64: 1, 8, 32>}]} {
    %c0 = arith.constant 0 : index
    %c0_0 = arith.constant 0 : index
    %c0_1 = arith.constant 0 : index
    %0 = vector.load %arg1[%c0, %c0_0, %c0_1] : memref<1x8x32xf32, #tpu.memory_space<vmem>>, vector<1x8x32xf32>
    %1 = vector.shape_cast %0 : vector<1x8x32xf32> to vector<8x32xf32>
    %cst = arith.constant dense<0.000000e+00> : vector<8xf32>
    %2 = vector.multi_reduction <add>, %1, %cst [1] : vector<8x32xf32> to vector<8xf32>
    %3 = vector.shape_cast %2 : vector<8xf32> to vector<8x1xf32>
    %cst_2 = arith.constant 3.200000e+01 : f32
    %4 = vector.broadcast %cst_2 : f32 to vector<8x1xf32>
    %5 = arith.divf %3, %4 : vector<8x1xf32>
    %6 = vector.broadcast %5 : vector<8x1xf32> to vector<8x32xf32>
    %7 = arith.subf %1, %6 : vector<8x32xf32>
    %8 = arith.mulf %7, %7 : vector<8x32xf32>
    %cst_3 = arith.constant dense<0.000000e+00> : vector<8xf32>
    %9 = vector.multi_reduction <add>, %8, %cst_3 [1] : vector<8x32xf32> to vector<8xf32>
    %10 = vector.shape_cast %9 : vector<8xf32> to vector<8x1xf32>
    %cst_4 = arith.constant 3.200000e+01 : f32
    %11 = vector.broadcast %cst_4 : f32 to vector<8x1xf32>
    %12 = arith.divf %10, %11 : vector<8x1xf32>
    %13 = vector.broadcast %5 : vector<8x1xf32> to vector<8x32xf32>
    %14 = arith.subf %1, %13 : vector<8x32xf32>
    %cst_5 = arith.constant 9.99999996E-13 : f32
    %15 = vector.broadcast %cst_5 : f32 to vector<8x1xf32>
    %16 = arith.addf %12, %15 : vector<8x1xf32>
    %17 = math.rsqrt %16 : vector<8x1xf32>
    %18 = vector.broadcast %17 : vector<8x1xf32> to vector<8x32xf32>
    %19 = arith.mulf %14, %18 : vector<8x32xf32>
    %c0_6 = arith.constant 0 : index
    %c0_7 = arith.constant 0 : index
    %20 = vector.load %arg2[%c0_6, %c0_7] : memref<1x32xf32, #tpu.memory_space<vmem>>, vector<1x32xf32>
    %21 = vector.broadcast %20 : vector<1x32xf32> to vector<8x32xf32>
    %22 = arith.mulf %19, %21 : vector<8x32xf32>
    %c0_8 = arith.constant 0 : index
    %c0_9 = arith.constant 0 : index
    %23 = vector.load %arg3[%c0_8, %c0_9] : memref<1x32xf32, #tpu.memory_space<vmem>>, vector<1x32xf32>
    %24 = vector.broadcast %23 : vector<1x32xf32> to vector<8x32xf32>
    %25 = arith.addf %22, %24 : vector<8x32xf32>
    %c0_10 = arith.constant 0 : index
    %c0_11 = arith.constant 0 : index
    %c0_12 = arith.constant 0 : index
    %26 = vector.load %arg4[%c0_10, %c0_11, %c0_12] : memref<1x8x32xf32, #tpu.memory_space<vmem>>, vector<1x8x32xf32>
    %27 = vector.shape_cast %26 : vector<1x8x32xf32> to vector<8x32xf32>
    %28 = vector.shape_cast %25 : vector<8x32xf32> to vector<1x8x32xf32>
    tpu.vector_store %arg4[%c0_10, %c0_11, %c0_12], %28 {strides = array<i32>} : memref<1x8x32xf32, #tpu.memory_space<vmem>>, vector<1x8x32xf32>,
    return
  }
  func.func @transform_0(%arg0: i32) -> (i32, i32, i32) {
    %c0_i32 = arith.constant 0 : i32
    %c0_i32_0 = arith.constant 0 : i32
    %c0_i32_1 = arith.constant 0 : i32
    return %arg0, %c0_i32, %c0_i32_0 : i32, i32, i32
  }
  func.func @transform_1(%arg0: i32) -> (i32, i32) {
    %c0_i32 = arith.constant 0 : i32
    %c0_i32_0 = arith.constant 0 : i32
    %c0_i32_1 = arith.constant 0 : i32
    return %c0_i32, %c0_i32_0 : i32, i32
  }
  func.func @transform_2(%arg0: i32) -> (i32, i32) {
    %c0_i32 = arith.constant 0 : i32
    %c0_i32_0 = arith.constant 0 : i32
    %c0_i32_1 = arith.constant 0 : i32
    return %c0_i32, %c0_i32_0 : i32, i32
  }
  func.func @transform_3(%arg0: i32) -> (i32, i32, i32) {
    %c0_i32 = arith.constant 0 : i32
    %c0_i32_0 = arith.constant 0 : i32
    %c0_i32_1 = arith.constant 0 : i32
    return %arg0, %c0_i32, %c0_i32_0 : i32, i32, i32
  }
}

module attributes {stable_mosaic.version = 11 : i64} {
  func.func @_encoder_layer_kernel(%arg0: i32, %arg1: memref<1x8x32xf32, #tpu.memory_space<vmem>>, %arg2: memref<1x1x8xf32, #tpu.memory_space<vmem>>, %arg3: memref<32x96xbf16, #tpu.memory_space<vmem>>, %arg4: memref<1x96xf32, #tpu.memory_space<vmem>>, %arg5: memref<32x32xbf16, #tpu.memory_space<vmem>>, %arg6: memref<1x32xf32, #tpu.memory_space<vmem>>, %arg7: memref<1x32xf32, #tpu.memory_space<vmem>>, %arg8: memref<1x32xf32, #tpu.memory_space<vmem>>, %arg9: memref<32x64xbf16, #tpu.memory_space<vmem>>, %arg10: memref<1x64xf32, #tpu.memory_space<vmem>>, %arg11: memref<64x32xbf16, #tpu.memory_space<vmem>>, %arg12: memref<1x32xf32, #tpu.memory_space<vmem>>, %arg13: memref<1x32xf32, #tpu.memory_space<vmem>>, %arg14: memref<1x32xf32, #tpu.memory_space<vmem>>, %arg15: memref<1x8x32xf32, #tpu.memory_space<vmem>>) attributes {dimension_semantics = [#tpu.dimension_semantics<parallel>], iteration_bounds = array<i64: 2>, scalar_prefetch = 0 : i64, scratch_operands = 0 : i64, tpu.core_type = #tpu.core_type<tc>, window_params = [{transform_indices = @transform_0, window_bounds = array<i64: 1, 8, 32>}, {transform_indices = @transform_1, window_bounds = array<i64: 1, 1, 8>}, {pipeline_mode = #tpu.pipeline_mode<synchronous>, transform_indices = @transform_2, window_bounds = array<i64: 32, 96>}, {pipeline_mode = #tpu.pipeline_mode<synchronous>, transform_indices = @transform_3, window_bounds = array<i64: 1, 96>}, {pipeline_mode = #tpu.pipeline_mode<synchronous>, transform_indices = @transform_4, window_bounds = array<i64: 32, 32>}, {pipeline_mode = #tpu.pipeline_mode<synchronous>, transform_indices = @transform_5, window_bounds = array<i64: 1, 32>}, {pipeline_mode = #tpu.pipeline_mode<synchronous>, transform_indices = @transform_6, window_bounds = array<i64: 1, 32>}, {pipeline_mode = #tpu.pipeline_mode<synchronous>, transform_indices = @transform_7, window_bounds = array<i64: 1, 32>}, {pipeline_mode = #tpu.pipeline_mode<synchronous>, transform_indices = @transform_8, window_bounds = array<i64: 32, 64>}, {pipeline_mode = #tpu.pipeline_mode<synchronous>, transform_indices = @transform_9, window_bounds = array<i64: 1, 64>}, {pipeline_mode = #tpu.pipeline_mode<synchronous>, transform_indices = @transform_10, window_bounds = array<i64: 64, 32>}, {pipeline_mode = #tpu.pipeline_mode<synchronous>, transform_indices = @transform_11, window_bounds = array<i64: 1, 32>}, {pipeline_mode = #tpu.pipeline_mode<synchronous>, transform_indices = @transform_12, window_bounds = array<i64: 1, 32>}, {pipeline_mode = #tpu.pipeline_mode<synchronous>, transform_indices = @transform_13, window_bounds = array<i64: 1, 32>}, {transform_indices = @transform_14, window_bounds = array<i64: 1, 8, 32>}]} {
    %c0 = arith.constant 0 : index
    %c0_0 = arith.constant 0 : index
    %c0_1 = arith.constant 0 : index
    %0 = vector.load %arg1[%c0, %c0_0, %c0_1] : memref<1x8x32xf32, #tpu.memory_space<vmem>>, vector<1x8x32xf32>
    %1 = vector.shape_cast %0 : vector<1x8x32xf32> to vector<8x32xf32>
    %c0_2 = arith.constant 0 : index
    %c0_3 = arith.constant 0 : index
    %c0_4 = arith.constant 0 : index
    %2 = vector.load %arg2[%c0_2, %c0_3, %c0_4] : memref<1x1x8xf32, #tpu.memory_space<vmem>>, vector<1x1x8xf32>
    %3 = vector.shape_cast %2 : vector<1x1x8xf32> to vector<1x8xf32>
    %4 = arith.truncf %1 : vector<8x32xf32> to vector<8x32xbf16>
    %c0_5 = arith.constant 0 : index
    %c0_6 = arith.constant 0 : index
    %5 = vector.load %arg3[%c0_5, %c0_6] : memref<32x96xbf16, #tpu.memory_space<vmem>>, vector<32x96xbf16>
    %cst = arith.constant dense<0.000000e+00> : vector<8x96xf32>
    %6 = tpu.matmul %4, %5, %cst {dimension_numbers = #tpu.dot_dimension_numbers<[1], [0], [0], [1], [0, 0, 1, 1], [], []>} : vector<8x32xbf16>, vector<32x96xbf16>, vector<8x96xf32> -> vector<8x96xf32>
    %c0_7 = arith.constant 0 : index
    %c0_8 = arith.constant 0 : index
    %7 = vector.load %arg4[%c0_7, %c0_8] : memref<1x96xf32, #tpu.memory_space<vmem>>, vector<1x96xf32>
    %8 = vector.broadcast %7 : vector<1x96xf32> to vector<8x96xf32>
    %9 = arith.addf %6, %8 : vector<8x96xf32>
    %10 = vector.extract_strided_slice %9 {offsets = [0, 0], sizes = [8, 8], strides = [1, 1]} : vector<8x96xf32> to vector<8x8xf32>
    %11 = arith.truncf %10 : vector<8x8xf32> to vector<8x8xbf16>
    %12 = vector.extract_strided_slice %9 {offsets = [0, 32], sizes = [8, 8], strides = [1, 1]} : vector<8x96xf32> to vector<8x8xf32>
    %13 = arith.truncf %12 : vector<8x8xf32> to vector<8x8xbf16>
    %14 = vector.extract_strided_slice %9 {offsets = [0, 64], sizes = [8, 8], strides = [1, 1]} : vector<8x96xf32> to vector<8x8xf32>
    %15 = arith.truncf %14 : vector<8x8xf32> to vector<8x8xbf16>
    %cst_9 = arith.constant dense<0.000000e+00> : vector<8x8xf32>
    %16 = tpu.matmul %11, %13, %cst_9 {dimension_numbers = #tpu.dot_dimension_numbers<[1], [1], [0], [0], [0, 0, 1, 0], [], []>} : vector<8x8xbf16>, vector<8x8xbf16>, vector<8x8xf32> -> vector<8x8xf32>
    %cst_10 = arith.constant 0.353553385 : f32
    %17 = vector.broadcast %cst_10 : f32 to vector<8x8xf32>
    %18 = arith.mulf %16, %17 : vector<8x8xf32>
    %19 = vector.broadcast %3 : vector<1x8xf32> to vector<8x8xf32>
    %20 = arith.addf %18, %19 : vector<8x8xf32>
    %cst_11 = arith.constant dense<0xFF800000> : vector<8xf32>
    %21 = vector.multi_reduction <maximumf>, %20, %cst_11 [1] : vector<8x8xf32> to vector<8xf32>
    %22 = vector.shape_cast %21 : vector<8xf32> to vector<8x1xf32>
    %23 = vector.broadcast %22 : vector<8x1xf32> to vector<8x8xf32>
    %24 = arith.subf %20, %23 : vector<8x8xf32>
    %25 = math.exp %24 : vector<8x8xf32>
    %cst_12 = arith.constant dense<0.000000e+00> : vector<8xf32>
    %26 = vector.multi_reduction <add>, %25, %cst_12 [1] : vector<8x8xf32> to vector<8xf32>
    %27 = vector.shape_cast %26 : vector<8xf32> to vector<8x1xf32>
    %28 = tpu.reciprocal %27 {approx = true} : vector<8x1xf32> -> vector<8x1xf32>
    %29 = vector.broadcast %28 : vector<8x1xf32> to vector<8x8xf32>
    %30 = arith.mulf %25, %29 : vector<8x8xf32>
    %31 = arith.truncf %30 : vector<8x8xf32> to vector<8x8xbf16>
    %cst_13 = arith.constant dense<0.000000e+00> : vector<8x8xf32>
    %32 = tpu.matmul %31, %15, %cst_13 {dimension_numbers = #tpu.dot_dimension_numbers<[1], [0], [0], [1], [0, 0, 1, 1], [], []>} : vector<8x8xbf16>, vector<8x8xbf16>, vector<8x8xf32> -> vector<8x8xf32>
    %33 = vector.extract_strided_slice %9 {offsets = [0, 8], sizes = [8, 8], strides = [1, 1]} : vector<8x96xf32> to vector<8x8xf32>
    %34 = arith.truncf %33 : vector<8x8xf32> to vector<8x8xbf16>
    %35 = vector.extract_strided_slice %9 {offsets = [0, 40], sizes = [8, 8], strides = [1, 1]} : vector<8x96xf32> to vector<8x8xf32>
    %36 = arith.truncf %35 : vector<8x8xf32> to vector<8x8xbf16>
    %37 = vector.extract_strided_slice %9 {offsets = [0, 72], sizes = [8, 8], strides = [1, 1]} : vector<8x96xf32> to vector<8x8xf32>
    %38 = arith.truncf %37 : vector<8x8xf32> to vector<8x8xbf16>
    %cst_14 = arith.constant dense<0.000000e+00> : vector<8x8xf32>
    %39 = tpu.matmul %34, %36, %cst_14 {dimension_numbers = #tpu.dot_dimension_numbers<[1], [1], [0], [0], [0, 0, 1, 0], [], []>} : vector<8x8xbf16>, vector<8x8xbf16>, vector<8x8xf32> -> vector<8x8xf32>
    %cst_15 = arith.constant 0.353553385 : f32
    %40 = vector.broadcast %cst_15 : f32 to vector<8x8xf32>
    %41 = arith.mulf %39, %40 : vector<8x8xf32>
    %42 = vector.broadcast %3 : vector<1x8xf32> to vector<8x8xf32>
    %43 = arith.addf %41, %42 : vector<8x8xf32>
    %cst_16 = arith.constant dense<0xFF800000> : vector<8xf32>
    %44 = vector.multi_reduction <maximumf>, %43, %cst_16 [1] : vector<8x8xf32> to vector<8xf32>
    %45 = vector.shape_cast %44 : vector<8xf32> to vector<8x1xf32>
    %46 = vector.broadcast %45 : vector<8x1xf32> to vector<8x8xf32>
    %47 = arith.subf %43, %46 : vector<8x8xf32>
    %48 = math.exp %47 : vector<8x8xf32>
    %cst_17 = arith.constant dense<0.000000e+00> : vector<8xf32>
    %49 = vector.multi_reduction <add>, %48, %cst_17 [1] : vector<8x8xf32> to vector<8xf32>
    %50 = vector.shape_cast %49 : vector<8xf32> to vector<8x1xf32>
    %51 = tpu.reciprocal %50 {approx = true} : vector<8x1xf32> -> vector<8x1xf32>
    %52 = vector.broadcast %51 : vector<8x1xf32> to vector<8x8xf32>
    %53 = arith.mulf %48, %52 : vector<8x8xf32>
    %54 = arith.truncf %53 : vector<8x8xf32> to vector<8x8xbf16>
    %cst_18 = arith.constant dense<0.000000e+00> : vector<8x8xf32>
    %55 = tpu.matmul %54, %38, %cst_18 {dimension_numbers = #tpu.dot_dimension_numbers<[1], [0], [0], [1], [0, 0, 1, 1], [], []>} : vector<8x8xbf16>, vector<8x8xbf16>, vector<8x8xf32> -> vector<8x8xf32>
    %56 = vector.extract_strided_slice %9 {offsets = [0, 16], sizes = [8, 8], strides = [1, 1]} : vector<8x96xf32> to vector<8x8xf32>
    %57 = arith.truncf %56 : vector<8x8xf32> to vector<8x8xbf16>
    %58 = vector.extract_strided_slice %9 {offsets = [0, 48], sizes = [8, 8], strides = [1, 1]} : vector<8x96xf32> to vector<8x8xf32>
    %59 = arith.truncf %58 : vector<8x8xf32> to vector<8x8xbf16>
    %60 = vector.extract_strided_slice %9 {offsets = [0, 80], sizes = [8, 8], strides = [1, 1]} : vector<8x96xf32> to vector<8x8xf32>
    %61 = arith.truncf %60 : vector<8x8xf32> to vector<8x8xbf16>
    %cst_19 = arith.constant dense<0.000000e+00> : vector<8x8xf32>
    %62 = tpu.matmul %57, %59, %cst_19 {dimension_numbers = #tpu.dot_dimension_numbers<[1], [1], [0], [0], [0, 0, 1, 0], [], []>} : vector<8x8xbf16>, vector<8x8xbf16>, vector<8x8xf32> -> vector<8x8xf32>
    %cst_20 = arith.constant 0.353553385 : f32
    %63 = vector.broadcast %cst_20 : f32 to vector<8x8xf32>
    %64 = arith.mulf %62, %63 : vector<8x8xf32>
    %65 = vector.broadcast %3 : vector<1x8xf32> to vector<8x8xf32>
    %66 = arith.addf %64, %65 : vector<8x8xf32>
    %cst_21 = arith.constant dense<0xFF800000> : vector<8xf32>
    %67 = vector.multi_reduction <maximumf>, %66, %cst_21 [1] : vector<8x8xf32> to vector<8xf32>
    %68 = vector.shape_cast %67 : vector<8xf32> to vector<8x1xf32>
    %69 = vector.broadcast %68 : vector<8x1xf32> to vector<8x8xf32>
    %70 = arith.subf %66, %69 : vector<8x8xf32>
    %71 = math.exp %70 : vector<8x8xf32>
    %cst_22 = arith.constant dense<0.000000e+00> : vector<8xf32>
    %72 = vector.multi_reduction <add>, %71, %cst_22 [1] : vector<8x8xf32> to vector<8xf32>
    %73 = vector.shape_cast %72 : vector<8xf32> to vector<8x1xf32>
    %74 = tpu.reciprocal %73 {approx = true} : vector<8x1xf32> -> vector<8x1xf32>
    %75 = vector.broadcast %74 : vector<8x1xf32> to vector<8x8xf32>
    %76 = arith.mulf %71, %75 : vector<8x8xf32>
    %77 = arith.truncf %76 : vector<8x8xf32> to vector<8x8xbf16>
    %cst_23 = arith.constant dense<0.000000e+00> : vector<8x8xf32>
    %78 = tpu.matmul %77, %61, %cst_23 {dimension_numbers = #tpu.dot_dimension_numbers<[1], [0], [0], [1], [0, 0, 1, 1], [], []>} : vector<8x8xbf16>, vector<8x8xbf16>, vector<8x8xf32> -> vector<8x8xf32>
    %79 = vector.extract_strided_slice %9 {offsets = [0, 24], sizes = [8, 8], strides = [1, 1]} : vector<8x96xf32> to vector<8x8xf32>
    %80 = arith.truncf %79 : vector<8x8xf32> to vector<8x8xbf16>
    %81 = vector.extract_strided_slice %9 {offsets = [0, 56], sizes = [8, 8], strides = [1, 1]} : vector<8x96xf32> to vector<8x8xf32>
    %82 = arith.truncf %81 : vector<8x8xf32> to vector<8x8xbf16>
    %83 = vector.extract_strided_slice %9 {offsets = [0, 88], sizes = [8, 8], strides = [1, 1]} : vector<8x96xf32> to vector<8x8xf32>
    %84 = arith.truncf %83 : vector<8x8xf32> to vector<8x8xbf16>
    %cst_24 = arith.constant dense<0.000000e+00> : vector<8x8xf32>
    %85 = tpu.matmul %80, %82, %cst_24 {dimension_numbers = #tpu.dot_dimension_numbers<[1], [1], [0], [0], [0, 0, 1, 0], [], []>} : vector<8x8xbf16>, vector<8x8xbf16>, vector<8x8xf32> -> vector<8x8xf32>
    %cst_25 = arith.constant 0.353553385 : f32
    %86 = vector.broadcast %cst_25 : f32 to vector<8x8xf32>
    %87 = arith.mulf %85, %86 : vector<8x8xf32>
    %88 = vector.broadcast %3 : vector<1x8xf32> to vector<8x8xf32>
    %89 = arith.addf %87, %88 : vector<8x8xf32>
    %cst_26 = arith.constant dense<0xFF800000> : vector<8xf32>
    %90 = vector.multi_reduction <maximumf>, %89, %cst_26 [1] : vector<8x8xf32> to vector<8xf32>
    %91 = vector.shape_cast %90 : vector<8xf32> to vector<8x1xf32>
    %92 = vector.broadcast %91 : vector<8x1xf32> to vector<8x8xf32>
    %93 = arith.subf %89, %92 : vector<8x8xf32>
    %94 = math.exp %93 : vector<8x8xf32>
    %cst_27 = arith.constant dense<0.000000e+00> : vector<8xf32>
    %95 = vector.multi_reduction <add>, %94, %cst_27 [1] : vector<8x8xf32> to vector<8xf32>
    %96 = vector.shape_cast %95 : vector<8xf32> to vector<8x1xf32>
    %97 = tpu.reciprocal %96 {approx = true} : vector<8x1xf32> -> vector<8x1xf32>
    %98 = vector.broadcast %97 : vector<8x1xf32> to vector<8x8xf32>
    %99 = arith.mulf %94, %98 : vector<8x8xf32>
    %100 = arith.truncf %99 : vector<8x8xf32> to vector<8x8xbf16>
    %cst_28 = arith.constant dense<0.000000e+00> : vector<8x8xf32>
    %101 = tpu.matmul %100, %84, %cst_28 {dimension_numbers = #tpu.dot_dimension_numbers<[1], [0], [0], [1], [0, 0, 1, 1], [], []>} : vector<8x8xbf16>, vector<8x8xbf16>, vector<8x8xf32> -> vector<8x8xf32>
    %102 = tpu.concatenate %32, %55, %78, %101 in 1 : vector<8x8xf32>, vector<8x8xf32>, vector<8x8xf32>, vector<8x8xf32> -> vector<8x32xf32>
    %103 = arith.truncf %102 : vector<8x32xf32> to vector<8x32xbf16>
    %c0_29 = arith.constant 0 : index
    %c0_30 = arith.constant 0 : index
    %104 = vector.load %arg5[%c0_29, %c0_30] : memref<32x32xbf16, #tpu.memory_space<vmem>>, vector<32x32xbf16>
    %cst_31 = arith.constant dense<0.000000e+00> : vector<8x32xf32>
    %105 = tpu.matmul %103, %104, %cst_31 {dimension_numbers = #tpu.dot_dimension_numbers<[1], [0], [0], [1], [0, 0, 1, 1], [], []>} : vector<8x32xbf16>, vector<32x32xbf16>, vector<8x32xf32> -> vector<8x32xf32>
    %c0_32 = arith.constant 0 : index
    %c0_33 = arith.constant 0 : index
    %106 = vector.load %arg6[%c0_32, %c0_33] : memref<1x32xf32, #tpu.memory_space<vmem>>, vector<1x32xf32>
    %107 = vector.broadcast %106 : vector<1x32xf32> to vector<8x32xf32>
    %108 = arith.addf %105, %107 : vector<8x32xf32>
    %109 = arith.addf %108, %1 : vector<8x32xf32>
    %cst_34 = arith.constant dense<0.000000e+00> : vector<8xf32>
    %110 = vector.multi_reduction <add>, %109, %cst_34 [1] : vector<8x32xf32> to vector<8xf32>
    %111 = vector.shape_cast %110 : vector<8xf32> to vector<8x1xf32>
    %cst_35 = arith.constant 3.200000e+01 : f32
    %112 = vector.broadcast %cst_35 : f32 to vector<8x1xf32>
    %113 = arith.divf %111, %112 : vector<8x1xf32>
    %114 = vector.broadcast %113 : vector<8x1xf32> to vector<8x32xf32>
    %115 = arith.subf %109, %114 : vector<8x32xf32>
    %116 = arith.mulf %115, %115 : vector<8x32xf32>
    %cst_36 = arith.constant dense<0.000000e+00> : vector<8xf32>
    %117 = vector.multi_reduction <add>, %116, %cst_36 [1] : vector<8x32xf32> to vector<8xf32>
    %118 = vector.shape_cast %117 : vector<8xf32> to vector<8x1xf32>
    %cst_37 = arith.constant 3.200000e+01 : f32
    %119 = vector.broadcast %cst_37 : f32 to vector<8x1xf32>
    %120 = arith.divf %118, %119 : vector<8x1xf32>
    %121 = vector.broadcast %113 : vector<8x1xf32> to vector<8x32xf32>
    %122 = arith.subf %109, %121 : vector<8x32xf32>
    %cst_38 = arith.constant 9.99999996E-13 : f32
    %123 = vector.broadcast %cst_38 : f32 to vector<8x1xf32>
    %124 = arith.addf %120, %123 : vector<8x1xf32>
    %125 = math.rsqrt %124 : vector<8x1xf32>
    %126 = vector.broadcast %125 : vector<8x1xf32> to vector<8x32xf32>
    %127 = arith.mulf %122, %126 : vector<8x32xf32>
    %c0_39 = arith.constant 0 : index
    %c0_40 = arith.constant 0 : index
    %128 = vector.load %arg7[%c0_39, %c0_40] : memref<1x32xf32, #tpu.memory_space<vmem>>, vector<1x32xf32>
    %129 = vector.broadcast %128 : vector<1x32xf32> to vector<8x32xf32>
    %130 = arith.mulf %127, %129 : vector<8x32xf32>
    %c0_41 = arith.constant 0 : index
    %c0_42 = arith.constant 0 : index
    %131 = vector.load %arg8[%c0_41, %c0_42] : memref<1x32xf32, #tpu.memory_space<vmem>>, vector<1x32xf32>
    %132 = vector.broadcast %131 : vector<1x32xf32> to vector<8x32xf32>
    %133 = arith.addf %130, %132 : vector<8x32xf32>
    %134 = arith.truncf %133 : vector<8x32xf32> to vector<8x32xbf16>
    %c0_43 = arith.constant 0 : index
    %c0_44 = arith.constant 0 : index
    %135 = vector.load %arg9[%c0_43, %c0_44] : memref<32x64xbf16, #tpu.memory_space<vmem>>, vector<32x64xbf16>
    %cst_45 = arith.constant dense<0.000000e+00> : vector<8x64xf32>
    %136 = tpu.matmul %134, %135, %cst_45 {dimension_numbers = #tpu.dot_dimension_numbers<[1], [0], [0], [1], [0, 0, 1, 1], [], []>} : vector<8x32xbf16>, vector<32x64xbf16>, vector<8x64xf32> -> vector<8x64xf32>
    %c0_46 = arith.constant 0 : index
    %c0_47 = arith.constant 0 : index
    %137 = vector.load %arg10[%c0_46, %c0_47] : memref<1x64xf32, #tpu.memory_space<vmem>>, vector<1x64xf32>
    %138 = vector.broadcast %137 : vector<1x64xf32> to vector<8x64xf32>
    %139 = arith.addf %136, %138 : vector<8x64xf32>
    %cst_48 = arith.constant 5.000000e-01 : f32
    %140 = vector.broadcast %cst_48 : f32 to vector<8x64xf32>
    %141 = arith.mulf %140, %139 : vector<8x64xf32>
    %cst_49 = arith.constant 0.707106769 : f32
    %142 = vector.broadcast %cst_49 : f32 to vector<8x64xf32>
    %143 = arith.mulf %139, %142 : vector<8x64xf32>
    %144 = math.erf %143 : vector<8x64xf32>
    %cst_50 = arith.constant 1.000000e+00 : f32
    %145 = vector.broadcast %cst_50 : f32 to vector<8x64xf32>
    %146 = arith.addf %145, %144 : vector<8x64xf32>
    %147 = arith.mulf %141, %146 : vector<8x64xf32>
    %148 = arith.truncf %147 : vector<8x64xf32> to vector<8x64xbf16>
    %c0_51 = arith.constant 0 : index
    %c0_52 = arith.constant 0 : index
    %149 = vector.load %arg11[%c0_51, %c0_52] : memref<64x32xbf16, #tpu.memory_space<vmem>>, vector<64x32xbf16>
    %cst_53 = arith.constant dense<0.000000e+00> : vector<8x32xf32>
    %150 = tpu.matmul %148, %149, %cst_53 {dimension_numbers = #tpu.dot_dimension_numbers<[1], [0], [0], [1], [0, 0, 1, 1], [], []>} : vector<8x64xbf16>, vector<64x32xbf16>, vector<8x32xf32> -> vector<8x32xf32>
    %c0_54 = arith.constant 0 : index
    %c0_55 = arith.constant 0 : index
    %151 = vector.load %arg12[%c0_54, %c0_55] : memref<1x32xf32, #tpu.memory_space<vmem>>, vector<1x32xf32>
    %152 = vector.broadcast %151 : vector<1x32xf32> to vector<8x32xf32>
    %153 = arith.addf %150, %152 : vector<8x32xf32>
    %154 = arith.addf %153, %133 : vector<8x32xf32>
    %cst_56 = arith.constant dense<0.000000e+00> : vector<8xf32>
    %155 = vector.multi_reduction <add>, %154, %cst_56 [1] : vector<8x32xf32> to vector<8xf32>
    %156 = vector.shape_cast %155 : vector<8xf32> to vector<8x1xf32>
    %cst_57 = arith.constant 3.200000e+01 : f32
    %157 = vector.broadcast %cst_57 : f32 to vector<8x1xf32>
    %158 = arith.divf %156, %157 : vector<8x1xf32>
    %159 = vector.broadcast %158 : vector<8x1xf32> to vector<8x32xf32>
    %160 = arith.subf %154, %159 : vector<8x32xf32>
    %161 = arith.mulf %160, %160 : vector<8x32xf32>
    %cst_58 = arith.constant dense<0.000000e+00> : vector<8xf32>
    %162 = vector.multi_reduction <add>, %161, %cst_58 [1] : vector<8x32xf32> to vector<8xf32>
    %163 = vector.shape_cast %162 : vector<8xf32> to vector<8x1xf32>
    %cst_59 = arith.constant 3.200000e+01 : f32
    %164 = vector.broadcast %cst_59 : f32 to vector<8x1xf32>
    %165 = arith.divf %163, %164 : vector<8x1xf32>
    %166 = vector.broadcast %158 : vector<8x1xf32> to vector<8x32xf32>
    %167 = arith.subf %154, %166 : vector<8x32xf32>
    %cst_60 = arith.constant 9.99999996E-13 : f32
    %168 = vector.broadcast %cst_60 : f32 to vector<8x1xf32>
    %169 = arith.addf %165, %168 : vector<8x1xf32>
    %170 = math.rsqrt %169 : vector<8x1xf32>
    %171 = vector.broadcast %170 : vector<8x1xf32> to vector<8x32xf32>
    %172 = arith.mulf %167, %171 : vector<8x32xf32>
    %c0_61 = arith.constant 0 : index
    %c0_62 = arith.constant 0 : index
    %173 = vector.load %arg13[%c0_61, %c0_62] : memref<1x32xf32, #tpu.memory_space<vmem>>, vector<1x32xf32>
    %174 = vector.broadcast %173 : vector<1x32xf32> to vector<8x32xf32>
    %175 = arith.mulf %172, %174 : vector<8x32xf32>
    %c0_63 = arith.constant 0 : index
    %c0_64 = arith.constant 0 : index
    %176 = vector.load %arg14[%c0_63, %c0_64] : memref<1x32xf32, #tpu.memory_space<vmem>>, vector<1x32xf32>
    %177 = vector.broadcast %176 : vector<1x32xf32> to vector<8x32xf32>
    %178 = arith.addf %175, %177 : vector<8x32xf32>
    %c0_65 = arith.constant 0 : index
    %c0_66 = arith.constant 0 : index
    %c0_67 = arith.constant 0 : index
    %179 = vector.load %arg15[%c0_65, %c0_66, %c0_67] : memref<1x8x32xf32, #tpu.memory_space<vmem>>, vector<1x8x32xf32>
    %180 = vector.shape_cast %179 : vector<1x8x32xf32> to vector<8x32xf32>
    %181 = vector.shape_cast %178 : vector<8x32xf32> to vector<1x8x32xf32>
    tpu.vector_store %arg15[%c0_65, %c0_66, %c0_67], %181 {strides = array<i32>} : memref<1x8x32xf32, #tpu.memory_space<vmem>>, vector<1x8x32xf32>,
    return
  }
  func.func @transform_0(%arg0: i32) -> (i32, i32, i32) {
    %c0_i32 = arith.constant 0 : i32
    %c0_i32_0 = arith.constant 0 : i32
    %c0_i32_1 = arith.constant 0 : i32
    return %arg0, %c0_i32, %c0_i32_0 : i32, i32, i32
  }
  func.func @transform_1(%arg0: i32) -> (i32, i32, i32) {
    %c0_i32 = arith.constant 0 : i32
    %c0_i32_0 = arith.constant 0 : i32
    %c0_i32_1 = arith.constant 0 : i32
    return %arg0, %c0_i32, %c0_i32_0 : i32, i32, i32
  }
  func.func @transform_2(%arg0: i32) -> (i32, i32) {
    %c0_i32 = arith.constant 0 : i32
    %c0_i32_0 = arith.constant 0 : i32
    %c0_i32_1 = arith.constant 0 : i32
    return %c0_i32, %c0_i32_0 : i32, i32
  }
  func.func @transform_3(%arg0: i32) -> (i32, i32) {
    %c0_i32 = arith.constant 0 : i32
    %c0_i32_0 = arith.constant 0 : i32
    %c0_i32_1 = arith.constant 0 : i32
    return %c0_i32, %c0_i32_0 : i32, i32
  }
  func.func @transform_4(%arg0: i32) -> (i32, i32) {
    %c0_i32 = arith.constant 0 : i32
    %c0_i32_0 = arith.constant 0 : i32
    %c0_i32_1 = arith.constant 0 : i32
    return %c0_i32, %c0_i32_0 : i32, i32
  }
  func.func @transform_5(%arg0: i32) -> (i32, i32) {
    %c0_i32 = arith.constant 0 : i32
    %c0_i32_0 = arith.constant 0 : i32
    %c0_i32_1 = arith.constant 0 : i32
    return %c0_i32, %c0_i32_0 : i32, i32
  }
  func.func @transform_6(%arg0: i32) -> (i32, i32) {
    %c0_i32 = arith.constant 0 : i32
    %c0_i32_0 = arith.constant 0 : i32
    %c0_i32_1 = arith.constant 0 : i32
    return %c0_i32, %c0_i32_0 : i32, i32
  }
  func.func @transform_7(%arg0: i32) -> (i32, i32) {
    %c0_i32 = arith.constant 0 : i32
    %c0_i32_0 = arith.constant 0 : i32
    %c0_i32_1 = arith.constant 0 : i32
    return %c0_i32, %c0_i32_0 : i32, i32
  }
  func.func @transform_8(%arg0: i32) -> (i32, i32) {
    %c0_i32 = arith.constant 0 : i32
    %c0_i32_0 = arith.constant 0 : i32
    %c0_i32_1 = arith.constant 0 : i32
    return %c0_i32, %c0_i32_0 : i32, i32
  }
  func.func @transform_9(%arg0: i32) -> (i32, i32) {
    %c0_i32 = arith.constant 0 : i32
    %c0_i32_0 = arith.constant 0 : i32
    %c0_i32_1 = arith.constant 0 : i32
    return %c0_i32, %c0_i32_0 : i32, i32
  }
  func.func @transform_10(%arg0: i32) -> (i32, i32) {
    %c0_i32 = arith.constant 0 : i32
    %c0_i32_0 = arith.constant 0 : i32
    %c0_i32_1 = arith.constant 0 : i32
    return %c0_i32, %c0_i32_0 : i32, i32
  }
  func.func @transform_11(%arg0: i32) -> (i32, i32) {
    %c0_i32 = arith.constant 0 : i32
    %c0_i32_0 = arith.constant 0 : i32
    %c0_i32_1 = arith.constant 0 : i32
    return %c0_i32, %c0_i32_0 : i32, i32
  }
  func.func @transform_12(%arg0: i32) -> (i32, i32) {
    %c0_i32 = arith.constant 0 : i32
    %c0_i32_0 = arith.constant 0 : i32
    %c0_i32_1 = arith.constant 0 : i32
    return %c0_i32, %c0_i32_0 : i32, i32
  }
  func.func @transform_13(%arg0: i32) -> (i32, i32) {
    %c0_i32 = arith.constant 0 : i32
    %c0_i32_0 = arith.constant 0 : i32
    %c0_i32_1 = arith.constant 0 : i32
    return %c0_i32, %c0_i32_0 : i32, i32
  }
  func.func @transform_14(%arg0: i32) -> (i32, i32, i32) {
    %c0_i32 = arith.constant 0 : i32
    %c0_i32_0 = arith.constant 0 : i32
    %c0_i32_1 = arith.constant 0 : i32
    return %arg0, %c0_i32, %c0_i32_0 : i32, i32, i32
  }
}

</mosaic_0001>

<bundles_post_ra>
// kernel: bert_for_house_qa.3
= control target key start
LH: loop header
LB: loop body
LE: loop exit
PB: predicated region body
PF: predicated region fallthrough
CT: control target
= control target key end

     0   :  { %s301_s12 = smov 0   ;;  %s327_s0 = inlined_call_operand.vmem [shape: f32[2,8,32], index: 0, kind: input, shape index: {}]   ;;  %s328_s1 = inlined_call_operand.vmem [shape: f32[1,32], index: 1, kind: input, shape index: {}]   ;;  %s329_s2 = inlined_call_operand.vmem [shape: f32[1,32], index: 2, kind: input, shape index: {}]   ;;  %s330_s3 = inlined_call_operand.vmem [shape: f32[2,8,32], index: 3, kind: output, shape index: {}]  }
   0x1 LB: > { %s252_s13 = sadd.s32 4294967295, %s279_s12   ;;  %p256_p0 = scmp.ge.s32.totalorder %s279_s12, 1  ;;  %s279_s12 = sphi %s301_s12, %s13_s12  }
   0x2   : > { %p136_p1 = scmp.lt.s32.totalorder %s279_s12, 3 }
   0x4   : > { %p137_p2 = pnand %p256_p0, %p136_p1 }
   0x5   : > { %p158_p3 = scmp.lt.s32.totalorder (!%p137_p2), %s252_s13, 1  ;;  %vm167_vm0 = vcmask (!%p137_p2), 261120   ;;  %v259_v11 = vld [vmem:[%s328_s1] ss:$0 sm:$0xff] (!%p137_p2) }
   0x6   : > { %140 = sbr.rel (%p137_p2) target bundleno = 331 (0x14b), region = 32  ;;  %v260_v13 = vld [vmem:[%s329_s2] ss:$0 sm:$0xff] (!%p137_p2) }
   0xd   : > { %s332_s13 = smov (!%p158_p3, %s252_s13), 1 }
   0xe   : > { %s257_s14 = sshll.u32 %s332_s13, 3 }
   0xf   : > { %s161_s17 = scalar_lea.vmem %s327_s0, %s257_s14  ;;  %s165_s24 = scalar_lea.vmem %s330_s3, %s257_s14 }
  0x10   : > { %v166_v0 = vld [vmem:[%s161_s17] sm:$0xff] }
  0x11   : > { %v168_v1 = vsel %vm167_vm0, %v166_v0, 0.0 }
  0x12   : > { %169 = vadd.xlane.f32.xlu0 %v168_v1 }
  0x9f   : > { %v170_v2 = vpop.xlane.xlu0 %169 }
  0xa0   : > { %v172_v3 = vmul.f32 0.03125, %v170_v2 }
  0xa2   : > { %v173_v4 = vsub.f32 %v166_v0, %v172_v3 }
  0xa4   : > { %v174_v5 = vmul.f32 %v173_v4, %v173_v4 }
  0xa6   : > { %v175_v6 = vsel %vm167_vm0, %v174_v5, 0.0 }
  0xa7   : > { %176 = vadd.xlane.f32.xlu0 %v175_v6 }
 0x134   : > { %v177_v7 = vpop.xlane.xlu0 %176 }
 0x135   : > { %v178_v8 = vmul.f32 0.03125, %v177_v7 }
 0x137   : > { %v179_v9 = vadd.f32 1e-12, %v178_v8 }
 0x139   : > { %271 = vrsqrt.f32 %v179_v9 }
 0x143   : > { %v272_v10 = vpop.eup %271 }
 0x144   : > { %v181_v12 = vmul.f32 %v272_v10, %v173_v4 }
 0x146   : > { %v189_v14 = vmul.f32 %v259_v11, %v181_v12 }
 0x148   : > { %v197_v15 = vadd.f32 %v260_v13, %v189_v14 }
 0x14a   : > { %198 = vst.msk [vmem:[%s165_s24] sm:$0xff] %vm167_vm0, %v197_v15 }
 0x14b PF: > { %s13_s12 = sadd.s32 1, %s279_s12  }
 0x14c   : > { %p10_p4 = scmp.ge.s32.totalorder %s13_s12, 4  }
 0x14e   :  { %12 = sbr.rel (!%p10_p4) target bundleno = 1 (0x1), region = 62 }

// kernel: bert_for_house_qa.4
= control target key start
LH: loop header
LB: loop body
LE: loop exit
PB: predicated region body
PF: predicated region fallthrough
CT: control target
= control target key end

     0   :  { %s1677_s29 = smov 0   ;;  %s1853_s0 = inlined_call_operand.vmem [shape: f32[2,8,32], index: 0, kind: input, shape index: {}]   ;;  %s1854_s1 = inlined_call_operand.vmem [shape: f32[2,1,8], index: 1, kind: input, shape index: {}]   ;;  %s1855_s2 = inlined_call_operand.vmem [shape: bf16[32,96], index: 2, kind: input, shape index: {}]   ;;  %s1856_s3 = inlined_call_operand.vmem [shape: f32[1,96], index: 3, kind: input, shape index: {}]   ;;  %s1857_s4 = inlined_call_operand.vmem [shape: bf16[32,32], index: 4, kind: input, shape index: {}]   ;;  %s1858_s5 = inlined_call_operand.vmem [shape: f32[1,32], index: 5, kind: input, shape index: {}]   ;;  %s1859_s6 = inlined_call_operand.vmem [shape: f32[1,32], index: 6, kind: input, shape index: {}]   ;;  %s1860_s7 = inlined_call_operand.vmem [shape: f32[1,32], index: 7, kind: input, shape index: {}]   ;;  %s1861_s8 = inlined_call_operand.vmem [shape: bf16[32,64], index: 8, kind: input, shape index: {}]   ;;  %s1862_s9 = inlined_call_operand.vmem [shape: f32[1,64], index: 9, kind: input, shape index: {}]   ;;  %s1863_s10 = inlined_call_operand.vmem [shape: bf16[64,32], index: 10, kind: input, shape index: {}]   ;;  %s1864_s11 = inlined_call_operand.vmem [shape: f32[1,32], index: 11, kind: input, shape index: {}]   ;;  %s1865_s12 = inlined_call_operand.vmem [shape: f32[1,32], index: 12, kind: input, shape index: {}]   ;;  %s1866_s13 = inlined_call_operand.vmem [shape: f32[1,32], index: 13, kind: input, shape index: {}]   ;;  %s1867_s14 = inlined_call_operand.vmem [shape: f32[2,8,32], index: 14, kind: output, shape index: {}]  }
   0x1 LB: > { %s1368_s30 = sadd.s32 4294967295, %s1584_s29   ;;  %p1372_p0 = scmp.ge.s32.totalorder %s1584_s29, 1  ;;  %s1584_s29 = sphi %s1677_s29, %s24_s29  }
   0x2   : > { %p419_p1 = scmp.lt.s32.totalorder %s1584_s29, 3 }
   0x4   : > { %p420_p2 = pnand %p1372_p0, %p419_p1 }
   0x5   : > { %v1546_v0 = vld [vmem:[%s1855_s2] sm:$0xff] (!%p420_p2)   ;;  %v1586_v1 = vmov (!%p420_p2), 0.0   ;;  %v1547_v2 = vld [vmem:[%s1855_s2 + $0x8] sm:$0xff] (!%p420_p2)   ;;  %vm1587_vm0 = vmmov (!%p420_p2), 0   ;;  %p466_p3 = scmp.lt.s32.totalorder (!%p420_p2), %s1368_s30, 1  ;;  %vm504_vm1 = vcmask (!%p420_p2), 261120  }
   0x6   : > { %423 = sbr.rel (%p420_p2) target bundleno = 2576 (0xa10), region = 76  ;;  %1438 = vmatprep.subr.bf16.mxu0 (!%p420_p2), %v1586_v1  ;;  %1446 = vmatprep.subr.bf16.mxu1 (!%p420_p2), %v1586_v1  ;;  %v1375_v5 = vld [vmem:[%s1856_s3] ss:$0 sm:$0xff] (!%p420_p2)  ;;  %s1588_s25 = smov (!%p420_p2), 120   ;;  %vm552_vm2 = vcmask (!%p420_p2), 64512   ;;  %vm624_vm3 = vcmask (!%p420_p2), 1043456  }
   0x7   : > { %1439 = vmatpush3.bf16.msra.mxu0 (!%p420_p2), %v1546_v0  ;;  %1442 = vmatprep.mubr.msk.bf16.mxu0 (!%p420_p2), %vm1587_vm0, %v1586_v1  ;;  %s1589_s26 = smov (!%p420_p2), 96   ;;  %s1590_s27 = smov (!%p420_p2), 80   ;;  %vm1017_vm4 = vcmask (!%p420_p2), 130048   ;;  %vm1019_vm5 = vcmask (!%p420_p2), 195584   ;;  %vm1231_vm6 = vcmask (!%p420_p2), 523264  }
   0x8   : > { %1440 = vmatprep.subr.bf16.mxu0 (!%p420_p2), %v1586_v1  ;;  %1448 = vmatprep.mubr.msk.bf16.mxu1 (!%p420_p2), %vm1587_vm0, %v1586_v1  ;;  %s1591_s28 = smov (!%p420_p2), 88   ;;  %s1592_s15 = smov (!%p420_p2), 72  }
   0x9   : > { %s1593_s16 = smov (!%p420_p2), 112   ;;  %s1594_s17 = smov (!%p420_p2), 104  }
   0xa   : > { %s1596_s23 = smov (!%p420_p2), 64   ;;  %s1597_s24 = smov (!%p420_p2), 40  }
   0xb   : > { %1441 = vmatpush3.bf16.msra.mxu0 (!%p420_p2), %v1547_v2  ;;  %s1601_s18 = smov (!%p420_p2), 24  }
   0xc   : > { %1452 = vmatprep.subr.bf16.mxu0 (!%p420_p2), %v1586_v1 }
   0xd   : > { %s1869_s30 = smov (!%p466_p3, %s1368_s30), 1 }
   0xe   : > { %s1373_s19 = sshll.u32 %s1869_s30, 3  ;;  %s472_s21 = scalar_lea.vmem %s1854_s1, %s1869_s30 }
   0xf   : > { %s469_s22 = scalar_lea.vmem %s1853_s0, %s1373_s19  ;;  %v1380_v24 = vld [vmem:[%s472_s21] ss:$0 sm:$0xff] }
  0x10   : > { %v1707_v3 = vld [vmem:[%s469_s22] sm:$0xff]  ;;  %s1595_s22 = smov 56  }
  0x11   : > { %v480_v4 = vpack.c.bf16 %v1707_v3, %v1707_v3 }
  0x13   : > { %1443 = vmatmul.mubr.msk.bf16.vlgmr.msra.gmra.mrb[0].mxu0 %vm504_vm1, %v480_v4 }
  0x14   : > { %1454 = vmatprep.mubr.msk.bf16.mxu0 %vm1587_vm0, %v1586_v1 }
  0xe6   : > { %v542_v6 = vpop.f32.mrb[0].mxu0 }
  0xe7   : > { %v543_v7 = vadd.f32 %v1375_v5, %v542_v6  ;;  %v1444_v8 = vpop.f32.mrb[1].mxu0 }
  0xe8   : > { %v545_v9 = vpop.f32.mrb[2].mxu0 }
  0xe9   : > { %v1717_v10 = vpack.c.bf16 %v543_v7, %v543_v7  ;;  %v1445_v11 = vpop.f32.mrb[3].mxu0 }
  0xeb   : > { %668 = vrot.lane.b32.xlu1 %v1717_v10, %s1588_s25  ;;  %550 = vrot.lane.b32.xlu0 %v1717_v10, %s1589_s26  ;;  %s1598_s25 = smov 48   ;;  %s1599_s26 = smov 8  }
  0xef   : > { %782 = vrot.lane.b32.xlu1 %v1717_v10, %s1590_s27  ;;  %670 = vrot.lane.b32.xlu0 %v1717_v10, %s1591_s28 }
  0xf3   : > { %894 = vrot.lane.b32.xlu1 %v1717_v10, %s1592_s15  ;;  %780 = vrot.lane.b32.xlu0 %v1717_v10, %s1593_s16 }
  0xf7   : > { %892 = vrot.lane.b32.xlu0 %v1717_v10, %s1594_s17  ;;  %s1600_s17 = smov 16  }
 0x15d   : > { %v551_v12 = vpop.permute.xlu0 %550  ;;  %v669_v15 = vpop.permute.xlu1 %668 }
 0x15e   : > { %v557_v13 = vsel %vm552_vm2, %v551_v12, 0 }
 0x15f   : > { %1447 = vmatpush3.bf16.xpose.msra.mxu1 %v557_v13 }
 0x160   : > { %1458 = vmatprep.subr.bf16.mxu1 %v1586_v1 }
 0x161   : > { %v671_v14 = vpop.permute.xlu0 %670  ;;  %v783_v17 = vpop.permute.xlu1 %782 }
 0x162   : > { %v676_v16 = vsel %vm552_vm2, %v671_v14, 0  ;;  %v788_v18 = vsel %vm552_vm2, %v783_v17, 0 }
 0x165   : > { %v895_v19 = vpop.permute.xlu1 %894  ;;  %v781_v20 = vpop.permute.xlu0 %780 }
 0x166   : > { %1449 = vmatmul.mubr.msk.bf16.vlgmr.msra.gmra.mrb[0].mxu1 %vm552_vm2, %v1717_v10  ;;  %v900_v21 = vsel %vm552_vm2, %v895_v19, 0 }
 0x167   : > { %1459 = vmatpush3.bf16.xpose.msra.mxu1 %v676_v16  ;;  %1460 = vmatprep.mubr.msk.bf16.mxu1 %vm1587_vm0, %v1586_v1 }
 0x168   : > { %1470 = vmatprep.subr.bf16.mxu1 %v1586_v1 }
 0x169   : > { %v893_v22 = vpop.permute.xlu0 %892 }
 0x16e   : > { %1461 = vmatmul.mubr.msk.bf16.vlgmr.msra.gmra.mrb[4].mxu1 %vm552_vm2, %v669_v15 }
 0x16f   : > { %1471 = vmatpush3.bf16.xpose.msra.mxu1 %v788_v18  ;;  %1472 = vmatprep.mubr.msk.bf16.mxu1 %vm1587_vm0, %v1586_v1 }
 0x170   : > { %1482 = vmatprep.subr.bf16.mxu1 %v1586_v1 }
 0x176   : > { %1473 = vmatmul.mubr.msk.bf16.vlgmr.msra.gmra.mrb[8].mxu1 %vm552_vm2, %v781_v20 }
 0x177   : > { %1483 = vmatpush3.bf16.xpose.msra.mxu1 %v900_v21  ;;  %1484 = vmatprep.mubr.msk.bf16.mxu1 %vm1587_vm0, %v1586_v1 }
 0x178   : > { %1494 = vmatprep.subr.bf16.mxu1 %v1586_v1 }
 0x17e   : > { %1485 = vmatmul.mubr.msk.bf16.vlgmr.msra.gmra.mrb[12].mxu1 %vm552_vm2, %v893_v22 }
 0x17f   : > { %1498 = vmatprep.mubr.msk.bf16.mxu1 %vm1587_vm0, %v1586_v1 }
 0x239   : > { %v593_v23 = vpop.f32.mrb[0].mxu1 }
 0x23a   : > { %v599_v25 = vmul.f32 0.35355338, %v593_v23  ;;  %v1450_v26 = vpop.f32.mrb[1].mxu1 }
 0x23b   : > { %v596_v27 = vpop.f32.mrb[2].mxu1 }
 0x23c   : > { %v1451_v28 = vpop.f32.mrb[3].mxu1  ;;  %v606_v29 = vadd.f32 %v1380_v24, %v599_v25 }
 0x23e   : > { %v607_v30 = vsel %vm552_vm2, %v606_v29, -inf }
 0x23f   : > { %608 = vmax.xlane.f32.xlu1 %v607_v30 }
 0x241   : > { %v712_v31 = vpop.f32.mrb[4].mxu1 }
 0x242   : > { %v718_v32 = vmul.f32 0.35355338, %v712_v31  ;;  %v1462_v33 = vpop.f32.mrb[5].mxu1 }
 0x243   : > { %v715_v34 = vpop.f32.mrb[6].mxu1 }
 0x244   : > { %v1463_v35 = vpop.f32.mrb[7].mxu1  ;;  %v719_v36 = vadd.f32 %v1380_v24, %v718_v32 }
 0x246   : > { %v720_v37 = vsel %vm552_vm2, %v719_v36, -inf }
 0x247   : > { %721 = vmax.xlane.f32.xlu0 %v720_v37 }
 0x249   : > { %v824_v38 = vpop.f32.mrb[8].mxu1 }
 0x24a   : > { %v830_v39 = vmul.f32 0.35355338, %v824_v38  ;;  %v1474_v40 = vpop.f32.mrb[9].mxu1 }
 0x24b   : > { %v827_v41 = vpop.f32.mrb[10].mxu1 }
 0x24c   : > { %v1475_v42 = vpop.f32.mrb[11].mxu1  ;;  %v831_v43 = vadd.f32 %v1380_v24, %v830_v39 }
 0x24d   : > { %v1548_v42 = vld [vmem:[%s1857_s4] sm:$0xff]  }
 0x24e   : > { %v832_v44 = vsel %vm552_vm2, %v831_v43, -inf  ;;  %1495 = vmatpush3.bf16.msra.mxu1 %v1548_v42 }
 0x24f   : > { %833 = vmax.xlane.f32.xlu0 %v832_v44  ;;  %1496 = vmatprep.subr.bf16.mxu1 %v1586_v1 }
 0x251   : > { %v936_v45 = vpop.f32.mrb[12].mxu1 }
 0x252   : > { %v942_v46 = vmul.f32 0.35355338, %v936_v45  ;;  %v1486_v47 = vpop.f32.mrb[13].mxu1 }
 0x253   : > { %v939_v48 = vpop.f32.mrb[14].mxu1 }
 0x254   : > { %v1487_v49 = vpop.f32.mrb[15].mxu1  ;;  %v943_v50 = vadd.f32 %v1380_v24, %v942_v46 }
 0x256   : > { %v944_v51 = vsel %vm552_vm2, %v943_v50, -inf }
 0x257   : > { %945 = vmax.xlane.f32.xlu1 %v944_v51 }
 0x2cc   : > { %v609_v52 = vpop.xlane.xlu1 %608 }
 0x2cd   : > { %v610_v53 = vsub.f32 %v606_v29, %v609_v52 }
 0x2cf   : > { %v611_v54 = vmul.f32 1.442695, %v610_v53 }
 0x2d1   : > { %1556 = vpow2.f32 %v611_v54 }
 0x2d4   : > { %v722_v55 = vpop.xlane.xlu0 %721 }
 0x2d5   : > { %v723_v56 = vsub.f32 %v719_v36, %v722_v55 }
 0x2d7   : > { %v724_v57 = vmul.f32 1.442695, %v723_v56 }
 0x2d9   : > { %1558 = vpow2.f32 %v724_v57 }
 0x2db   : > { %v1557_v58 = vpop.eup %1556 }
 0x2dc   : > { %v834_v59 = vpop.xlane.xlu0 %833  ;;  %v613_v60 = vsel %vm552_vm2, %v1557_v58, 0.0 }
 0x2dd   : > { %v835_v61 = vsub.f32 %v831_v43, %v834_v59  ;;  %614 = vadd.xlane.f32.xlu0 %v613_v60  ;;  %v1549_v43 = vld [vmem:[%s1857_s4 + $0x8] sm:$0xff]   ;;  %v1388_v59 = vld [vmem:[%s1858_s5] ss:$0 sm:$0xff] }
 0x2de   : > { %1497 = vmatpush3.bf16.msra.mxu1 %v1549_v43 }
 0x2df   : > { %v836_v62 = vmul.f32 1.442695, %v835_v61  ;;  %1510 = vmatprep.subr.bf16.mxu1 %v1586_v1 }
 0x2e1   : > { %1560 = vpow2.f32 %v836_v62 }
 0x2e3   : > { %v1559_v63 = vpop.eup %1558 }
 0x2e4   : > { %v726_v0 = vsel %vm552_vm2, %v1559_v63, 0.0  ;;  %v946_v5 = vpop.xlane.xlu1 %945 }
 0x2e5   : > { %727 = vadd.xlane.f32.xlu1 %v726_v0  ;;  %v947_v6 = vsub.f32 %v943_v50, %v946_v5 }
 0x2e7   : > { %v948_v7 = vmul.f32 1.442695, %v947_v6 }
 0x2e9   : > { %1562 = vpow2.f32 %v948_v7 }
 0x2eb   : > { %v1561_v2 = vpop.eup %1560 }
 0x2ec   : > { %v838_v4 = vsel %vm552_vm2, %v1561_v2, 0.0 }
 0x2ed   : > { %839 = vadd.xlane.f32.xlu0 %v838_v4 }
 0x2f3   : > { %v1563_v8 = vpop.eup %1562 }
 0x2f4   : > { %v950_v9 = vsel %vm552_vm2, %v1563_v8, 0.0 }
 0x2f6   : > { %732 = vrot.lane.b32.xlu1 %v1717_v10, %s1595_s22  ;;  %s476_s22 = scalar_lea.vmem %s1867_s14, %s1373_s19 }
 0x303   : > { %619 = vrot.lane.b32.xlu0 %v1717_v10, %s1596_s23 }
 0x307   : > { %956 = vrot.lane.b32.xlu0 %v1717_v10, %s1597_s24 }
 0x31a   : > { %951 = vadd.xlane.f32.xlu1 %v950_v9 }
 0x32b   : > { %844 = vrot.lane.b32.xlu1 %v1717_v10, %s1598_s25 }
 0x36a   : > { %v615_v11 = vpop.xlane.xlu0 %614 }
 0x36b   : > { %1564 = vrcp.f32 %v615_v11  ;;  %v1550_v11 = vld [vmem:[%s1861_s8] sm:$0xff]  }
 0x372   : > { %v728_v12 = vpop.xlane.xlu1 %727 }
 0x373   : > { %1566 = vrcp.f32 %v728_v12 }
 0x375   : > { %v1565_v13 = vpop.eup %1564 }
 0x376   : > { %v617_v15 = vmul.f32 %v1565_v13, %v1557_v58  ;;  %v733_v18 = vpop.permute.xlu1 %732 }
 0x377   : > { %v738_v21 = vsel %vm624_vm3, %v733_v18, 0  ;;  %v1393_v18 = vld [vmem:[%s1860_s7] ss:$0 sm:$0xff] }
 0x378   : > { %v618_v19 = vpack.c.bf16 %v617_v15, %v617_v15 }
 0x37a   : > { %v840_v14 = vpop.xlane.xlu0 %839 }
 0x37b   : > { %1568 = vrcp.f32 %v840_v14 }
 0x37d   : > { %v1567_v20 = vpop.eup %1566 }
 0x37e   : > { %v620_v16 = vpop.permute.xlu0 %619  ;;  %v730_v10 = vmul.f32 %v1567_v20, %v1559_v63 }
 0x37f   : > { %v626_v17 = vsel %vm624_vm3, %v620_v16, 0  ;;  %v1392_v16 = vld [vmem:[%s1859_s6] ss:$0 sm:$0xff] }
 0x380   : > { %1453 = vmatpush3.bf16.msra.mxu0 %v626_v17  ;;  %v731_v22 = vpack.c.bf16 %v730_v10, %v730_v10  ;;  %v1552_v10 = vld [vmem:[%s1863_s10] sm:$0xff]  }
 0x381   : > { %1464 = vmatprep.subr.bf16.mxu0 %v1586_v1 }
 0x382   : > { %v957_v28 = vpop.permute.xlu0 %956 }
 0x383   : > { %1455 = vmatmul.mubr.msk.bf16.vlgmr.msra.gmra.mrb[4].mxu0 %vm552_vm2, %v618_v19  ;;  %v962_v30 = vsel %vm624_vm3, %v957_v28, 0 }
 0x384   : > { %1465 = vmatpush3.bf16.msra.mxu0 %v738_v21  ;;  %1466 = vmatprep.mubr.msk.bf16.mxu0 %vm1587_vm0, %v1586_v1 }
 0x385   : > { %1476 = vmatprep.subr.bf16.mxu0 %v1586_v1  ;;  %v1569_v23 = vpop.eup %1568 }
 0x386   : > { %v842_v25 = vmul.f32 %v1569_v23, %v1561_v2  ;;  %v1554_v23 = vld [vmem:[%s1863_s10 + $0x10] sm:$0xff]  }
 0x388   : > { %v843_v29 = vpack.c.bf16 %v842_v25, %v842_v25  ;;  %v1394_v25 = vld [vmem:[%s1862_s9] ss:$0 sm:$0xff] }
 0x38b   : > { %1467 = vmatmul.mubr.msk.bf16.vlgmr.msra.gmra.mrb[8].mxu0 %vm552_vm2, %v731_v22  ;;  %v1553_v22 = vld [vmem:[%s1863_s10 + $0x8] sm:$0xff]  }
 0x38c   : > { %1478 = vmatprep.mubr.msk.bf16.mxu0 %vm1587_vm0, %v1586_v1 }
 0x3a7   : > { %v952_v24 = vpop.xlane.xlu1 %951 }
 0x3a8   : > { %1570 = vrcp.f32 %v952_v24  ;;  %v1555_v24 = vld [vmem:[%s1863_s10 + $0x18] sm:$0xff]  }
 0x3ab   : > { %v845_v26 = vpop.permute.xlu1 %844 }
 0x3ac   : > { %v850_v27 = vsel %vm624_vm3, %v845_v26, 0 }
 0x3ad   : > { %1477 = vmatpush3.bf16.msra.mxu0 %v850_v27 }
 0x3ae   : > { %1488 = vmatprep.subr.bf16.mxu0 %v1586_v1 }
 0x3b0   : > { %1479 = vmatmul.mubr.msk.bf16.vlgmr.msra.gmra.mrb[12].mxu0 %vm552_vm2, %v843_v29 }
 0x3b1   : > { %1489 = vmatpush3.bf16.msra.mxu0 %v962_v30  ;;  %1490 = vmatprep.mubr.msk.bf16.mxu0 %vm1587_vm0, %v1586_v1 }
 0x3b2   : > { %v1571_v31 = vpop.eup %1570  ;;  %1502 = vmatprep.subr.bf16.mxu0 %v1586_v1 }
 0x3b3   : > { %v954_v32 = vmul.f32 %v1571_v31, %v1563_v8 }
 0x3b5   : > { %v955_v33 = vpack.c.bf16 %v954_v32, %v954_v32 }
 0x3b8   : > { %1491 = vmatmul.mubr.msk.bf16.vlgmr.msra.gmra.mrb[16].mxu0 %vm552_vm2, %v955_v33 }
 0x3b9   : > { %1506 = vmatprep.mubr.msk.bf16.mxu0 %vm1587_vm0, %v1586_v1  ;;  %1503 = vmatpush3.bf16.msra.mxu0 %v1550_v11 }
 0x3ba   : > { %1504 = vmatprep.subr.bf16.mxu0 %v1586_v1 }
 0x456   : > { %v662_v34 = vpop.f32.mrb[4].mxu0 }
 0x457   : > { %v1456_v35 = vpop.f32.mrb[5].mxu0 }
 0x458   : > { %v665_v36 = vpop.f32.mrb[6].mxu0 }
 0x459   : > { %v1457_v37 = vpop.f32.mrb[7].mxu0  ;;  %v1398_v36 = vld [vmem:[%s1864_s11] ss:$0 sm:$0xff] }
 0x45e   : > { %v774_v38 = vpop.f32.mrb[8].mxu0 }
 0x45f   : > { %1005 = vrot.lane.b32.xlu1 %v774_v38, %s1599_s26  ;;  %v1468_v39 = vpop.f32.mrb[9].mxu0 }
 0x460   : > { %v777_v40 = vpop.f32.mrb[10].mxu0 }
 0x461   : > { %v1469_v41 = vpop.f32.mrb[11].mxu0 }
 0x483   : > { %v886_v44 = vpop.f32.mrb[12].mxu0 }
 0x484   : > { %1009 = vrot.lane.b32.xlu0 %v886_v44, %s1600_s17  ;;  %v1480_v45 = vpop.f32.mrb[13].mxu0 }
 0x485   : > { %v889_v46 = vpop.f32.mrb[14].mxu0 }
 0x486   : > { %v1481_v47 = vpop.f32.mrb[15].mxu0 }
 0x48b   : > { %v998_v48 = vpop.f32.mrb[16].mxu0 }
 0x48c   : > { %1013 = vrot.lane.b32.xlu1 %v998_v48, %s1601_s18  ;;  %v1492_v49 = vpop.f32.mrb[17].mxu0 }
 0x48d   : > { %v1001_v50 = vpop.f32.mrb[18].mxu0 }
 0x48e   : > { %v1493_v51 = vpop.f32.mrb[19].mxu0 }
 0x4d1   : > { %v1006_v52 = vpop.permute.xlu1 %1005 }
 0x4d2   : > { %v1016_v54 = vsel %vm552_vm2, %v662_v34, %v1006_v52 }
 0x4f6   : > { %v1010_v53 = vpop.permute.xlu0 %1009 }
 0x4f7   : > { %v1018_v55 = vsel %vm1017_vm4, %v1016_v54, %v1010_v53  ;;  %v1404_v53 = vld [vmem:[%s1865_s12] ss:$0 sm:$0xff] }
 0x4fe   : > { %v1014_v56 = vpop.permute.xlu1 %1013 }
 0x4ff   : > { %v1020_v57 = vsel %vm1019_vm5, %v1018_v55, %v1014_v56  ;;  %v1405_v55 = vld [vmem:[%s1866_s13] ss:$0 sm:$0xff] }
 0x500   : > { %v1021_v58 = vpack.c.bf16 %v1020_v57, %v1020_v57 }
 0x502   : > { %1499 = vmatmul.mubr.msk.bf16.vlgmr.msra.gmra.mrb[16].mxu1 %vm504_vm1, %v1021_v58 }
 0x503   : > { %1518 = vmatprep.mubr.msk.bf16.mxu1 %vm1587_vm0, %v1586_v1  ;;  %1511 = vmatpush3.bf16.msra.mxu1 %v1552_v10 }
 0x504   : > { %1512 = vmatprep.subr.bf16.mxu1 %v1586_v1 }
 0x507   : > { %1513 = vmatpush3.bf16.msra.mxu1 %v1553_v22 }
 0x508   : > { %1514 = vmatprep.subr.bf16.mxu1 %v1586_v1 }
 0x50b   : > { %1515 = vmatpush3.bf16.msra.mxu1 %v1554_v23 }
 0x50c   : > { %1516 = vmatprep.subr.bf16.mxu1 %v1586_v1 }
 0x50f   : > { %1517 = vmatpush3.bf16.msra.mxu1 %v1555_v24 }
 0x5d5   : > { %v1082_v60 = vpop.f32.mrb[16].mxu1 }
 0x5d6   : > { %v1083_v61 = vadd.f32 %v1388_v59, %v1082_v60  ;;  %v1500_v62 = vpop.f32.mrb[17].mxu1 }
 0x5d7   : > { %v1085_v63 = vpop.f32.mrb[18].mxu1 }
 0x5d8   : > { %v1501_v0 = vpop.f32.mrb[19].mxu1  ;;  %v1088_v2 = vadd.f32 %v1083_v61, %v1707_v3  ;;  %v1551_v3 = vld [vmem:[%s1861_s8 + $0x8] sm:$0xff]  }
 0x5d9   : > { %1505 = vmatpush3.bf16.msra.mxu0 %v1551_v3 }
 0x5da   : > { %v1089_v4 = vsel %vm504_vm1, %v1088_v2, 0.0 }
 0x5db   : > { %1090 = vadd.xlane.f32.xlu0 %v1089_v4 }
 0x668   : > { %v1091_v5 = vpop.xlane.xlu0 %1090 }
 0x669   : > { %v1093_v6 = vmul.f32 0.03125, %v1091_v5 }
 0x66b   : > { %v1094_v7 = vsub.f32 %v1088_v2, %v1093_v6 }
 0x66d   : > { %v1095_v8 = vmul.f32 %v1094_v7, %v1094_v7 }
 0x66f   : > { %v1096_v9 = vsel %vm504_vm1, %v1095_v8, 0.0 }
 0x670   : > { %1097 = vadd.xlane.f32.xlu1 %v1096_v9 }
 0x6fd   : > { %v1098_v12 = vpop.xlane.xlu1 %1097 }
 0x6fe   : > { %v1099_v13 = vmul.f32 0.03125, %v1098_v12 }
 0x700   : > { %v1100_v14 = vadd.f32 1e-12, %v1099_v13 }
 0x702   : > { %1572 = vrsqrt.f32 %v1100_v14 }
 0x70c   : > { %v1573_v15 = vpop.eup %1572 }
 0x70d   : > { %v1102_v17 = vmul.f32 %v1573_v15, %v1094_v7 }
 0x70f   : > { %v1110_v19 = vmul.f32 %v1392_v16, %v1102_v17 }
 0x711   : > { %v1118_v20 = vadd.f32 %v1393_v18, %v1110_v19 }
 0x713   : > { %v1119_v21 = vpack.c.bf16 %v1118_v20, %v1118_v20 }
 0x715   : > { %1507 = vmatmul.mubr.msk.bf16.vlgmr.msra.gmra.mrb[20].mxu0 %vm504_vm1, %v1119_v21 }
 0x7e8   : > { %v1180_v26 = vpop.f32.mrb[20].mxu0 }
 0x7e9   : > { %v1181_v27 = vadd.f32 %v1394_v25, %v1180_v26  ;;  %v1508_v28 = vpop.f32.mrb[21].mxu0 }
 0x7ea   : > { %v1183_v29 = vpop.f32.mrb[22].mxu0 }
 0x7eb   : > { %v1187_v30 = vmul.f32 0.70710677, %v1181_v27  ;;  %v1509_v31 = vpop.f32.mrb[23].mxu0  ;;  %v1186_v33 = vmul.f32 0.5, %v1181_v27 }
 0x7ed   : > { %1574 = verf.f32 %v1187_v30 }
 0x7f7   : > { %v1575_v32 = vpop.eup %1574 }
 0x7f8   : > { %v1189_v34 = vadd.f32 1.0, %v1575_v32 }
 0x7fa   : > { %v1190_v1 = vmul.f32 %v1189_v34, %v1186_v33 }
 0x7fc   : > { %v1191_v35 = vpack.c.bf16 %v1190_v1, %v1190_v1 }
 0x7fe   : > { %1519 = vmatmul.mubr.msk.bf16.vlgmr.msra.gmra.mrb[20].mxu1 %vm1231_vm6, %v1191_v35 }
 0x8d1   : > { %v1269_v37 = vpop.f32.mrb[20].mxu1 }
 0x8d2   : > { %v1270_v38 = vadd.f32 %v1398_v36, %v1269_v37  ;;  %v1520_v39 = vpop.f32.mrb[21].mxu1 }
 0x8d3   : > { %v1272_v40 = vpop.f32.mrb[22].mxu1 }
 0x8d4   : > { %v1521_v41 = vpop.f32.mrb[23].mxu1  ;;  %v1275_v42 = vadd.f32 %v1270_v38, %v1118_v20 }
 0x8d6   : > { %v1276_v43 = vsel %vm504_vm1, %v1275_v42, 0.0 }
 0x8d7   : > { %1277 = vadd.xlane.f32.xlu0 %v1276_v43 }
 0x964   : > { %v1278_v44 = vpop.xlane.xlu0 %1277 }
 0x965   : > { %v1279_v45 = vmul.f32 0.03125, %v1278_v44 }
 0x967   : > { %v1280_v46 = vsub.f32 %v1275_v42, %v1279_v45 }
 0x969   : > { %v1281_v47 = vmul.f32 %v1280_v46, %v1280_v46 }
 0x96b   : > { %v1282_v48 = vsel %vm504_vm1, %v1281_v47, 0.0 }
 0x96c   : > { %1283 = vadd.xlane.f32.xlu0 %v1282_v48 }
 0x9f9   : > { %v1284_v49 = vpop.xlane.xlu0 %1283 }
 0x9fa   : > { %v1285_v50 = vmul.f32 0.03125, %v1284_v49 }
 0x9fc   : > { %v1286_v51 = vadd.f32 1e-12, %v1285_v50 }
 0x9fe   : > { %1576 = vrsqrt.f32 %v1286_v51 }
 0xa08   : > { %v1577_v52 = vpop.eup %1576 }
 0xa09   : > { %v1288_v54 = vmul.f32 %v1577_v52, %v1280_v46 }
 0xa0b   : > { %v1296_v56 = vmul.f32 %v1404_v53, %v1288_v54 }
 0xa0d   : > { %v1304_v57 = vadd.f32 %v1405_v55, %v1296_v56 }
 0xa0f   : > { %1305 = vst.msk [vmem:[%s476_s22] sm:$0xff] %vm504_vm1, %v1304_v57 }
 0xa10 PF: > { %s24_s29 = sadd.s32 1, %s1584_s29  }
 0xa11   : > { %p21_p4 = scmp.ge.s32.totalorder %s24_s29, 4  }
 0xa13   :  { %23 = sbr.rel (!%p21_p4) target bundleno = 1 (0x1), region = 109 }

</bundles_post_ra>
